<compile_context>
chip_gen: v7x
topology: tpu7x:2x2x1
jax: 0.10.0
libtpu: 0.0.40
codegen_flags: <defaults>
</compile_context>

<pallas_src>
from functools import partial

import jax
import jax.numpy as jnp
from jax.experimental import pallas as pl
from jax.experimental.pallas import tpu as pltpu

LANE = 128
# Worst-case tile footprint of the GEMM (tm=512, tn=2048, bf16 out/residual,
# f32 acc) is ~17 MiB; 32 MiB leaves headroom everywhere and is only half of a
# v7x TensorCore's 64 MiB physical VMEM (the old 64 MiB request left none).
_VMEM_LIMIT = 32 * 1024 * 1024


def _round_up(n, m):
    return ((n + m - 1) // m) * m


# ---------------------------------------------------------------------------
# Kernel 1: fused  (x @ w) + bias  [+ residual]  [relu]    (1x1 conv + BN)
#   grid = (m_tiles, n_tiles, k_tiles), f32 accumulator in VMEM scratch.
# ---------------------------------------------------------------------------
def _mm_bias_kernel(x_ref, w_ref, b_ref, *rest, apply_relu, has_residual):
    if has_residual:
        r_ref, o_ref, acc_ref = rest
    else:
        o_ref, acc_ref = rest
    k = pl.program_id(2)

    @pl.when(k == 0)
    def _():
        acc_ref[...] = jnp.zeros_like(acc_ref)

    acc_ref[...] += jnp.dot(x_ref[...], w_ref[...],
                            preferred_element_type=jnp.float32)

    @pl.when(k == pl.num_programs(2) - 1)
    def _():
        y = acc_ref[...] + b_ref[...]
        if has_residual:
            y = y + r_ref[...].astype(jnp.float32)
        if apply_relu:
            y = jnp.maximum(y, 0.0)
        o_ref[...] = y.astype(o_ref.dtype)


def matmul_bias_act(x2d, w, bias, residual=None, relu=True,
                    out_dtype=jnp.bfloat16, tm=512, tk=512):
    """x2d: (M, K).  w: (K, Cout) bf16 (BN scale pre-folded).  bias: (Cout,) f32.
    residual (optional): (M, Cout), added (in f32) before the ReLU."""
    M, K = x2d.shape
    Kw, Cout = w.shape
    assert K == Kw
    x2d = x2d.astype(jnp.bfloat16)
    w = w.astype(jnp.bfloat16)

    tm = min(tm, _round_up(M, 8))            # ragged last M block handled by Pallas
    # Pick tn so nn == 1 whenever Cout fits one lane-dense tile: the activation
    # operand (the large M*K stream) is then read from HBM exactly once.
    tn = Cout if Cout <= 2048 else 1024
    if Cout % tn != 0:
        tn = Cout                            # Cout is padded to a multiple of 128
    if K % tk != 0 or K <= tk:
        tk = K                               # only tile K when it divides evenly
    nm, nn, nk = pl.cdiv(M, tm), Cout // tn, K // tk

    bias2 = bias.reshape(1, Cout).astype(jnp.float32)
    inputs = [x2d, w, bias2]
    in_specs = [
        pl.BlockSpec((tm, tk), lambda i, j, k: (i, k)),
        pl.BlockSpec((tk, tn), lambda i, j, k: (k, j)),
        pl.BlockSpec((1, tn), lambda i, j, k: (0, j)),
    ]
    if residual is not None:
        inputs.append(residual.astype(jnp.bfloat16))     # bf16 residual stream
        in_specs.append(pl.BlockSpec((tm, tn), lambda i, j, k: (i, j)))

    kernel = partial(_mm_bias_kernel, apply_relu=relu,
                     has_residual=residual is not None)
    return pl.pallas_call(
        kernel,
        out_shape=jax.ShapeDtypeStruct((M, Cout), out_dtype),
        grid=(nm, nn, nk),
        in_specs=in_specs,
        out_specs=pl.BlockSpec((tm, tn), lambda i, j, k: (i, j)),
        scratch_shapes=[pltpu.VMEM((tm, tn), jnp.float32)],
        compiler_params=pltpu.CompilerParams(
            dimension_semantics=("parallel", "parallel", "arbitrary"),
            vmem_limit_bytes=_VMEM_LIMIT),
    )(*inputs)


# ---------------------------------------------------------------------------
# Kernel 2: fused 3x3 conv (stride, pad=1) + BN bias + ReLU.
#   grid = (ho, 3): one output row of the WHOLE batch per step (M = N*wo),
#   dy is the reduction axis.  Weights are resident (constant index_map).
#   Per dy: one wide matmul per W-parity plane against N-concatenated dx taps,
#   then tap column shifts via pltpu.roll on the f32 result.
# ---------------------------------------------------------------------------
def _conv3x3_kernel(x_ref, w_ref, b_ref, o_ref, acc_ref, *, stride, wo):
    """x_ref: (N, stride, Wps, Cp) bf16 parity-split padded input row.
       w_ref: (3, Cp, 3*Cp) bf16 resident tap weights (co axis = dx taps,
              grouped by parity plane).  b_ref: (1, Cp) f32.
       o_ref: (N, wo, Cp) bf16.  acc_ref: (N*Wps, Cp) f32."""
    dy = pl.program_id(1)
    n, _, wps, cp = x_ref.shape
    rows = n * wps

    @pl.when(dy == 0)
    def _():
        acc_ref[...] = jnp.zeros_like(acc_ref)

    xv = x_ref[...]                              # (N, stride, Wps, Cp)
    w_dy = w_ref[dy]                             # (Cp, 3*Cp), resident in VMEM
    contrib = None
    col = 0
    for p in range(stride):                      # parity planes (static unroll)
        dxs = [dx for dx in range(3) if dx % stride == p]
        if not dxs:
            continue
        nt = len(dxs)
        xp = xv[:, p].reshape(rows, cp)          # sublane-aligned (Wps % 8 == 0)
        y = jnp.dot(xp, w_dy[:, col * cp:(col + nt) * cp],
                    preferred_element_type=jnp.float32)   # wide-N MXU matmul
        for t, dx in enumerate(dxs):
            o = dx // stride                     # column shift of this tap
            slab = y[:, t * cp:(t + 1) * cp]
            if o:
                # out[r] += y[r + o]  (wrapped rows land only in discarded j>=wo)
                slab = pltpu.roll(slab, shift=rows - o, axis=0)
            contrib = slab if contrib is None else contrib + slab
        col += nt
    acc_ref[...] += contrib

    @pl.when(dy == pl.num_programs(1) - 1)
    def _():
        val = jnp.maximum(acc_ref[...] + b_ref[...], 0.0)
        o_ref[...] = val.reshape(n, wps, cp)[:, :wo, :].astype(o_ref.dtype)


def conv3x3_bn_relu(h_nhwc, w2_packed, b2, stride):
    """h_nhwc: (N,H,W,Cp) bf16.  w2_packed: (3, Cp, 3*Cp) bf16.  b2: (Cp,) f32."""
    N, H, W, Cp = h_nhwc.shape
    ho = (H - 1) // stride + 1
    wo = (W - 1) // stride + 1
    Hp = H + 2
    Wraw = W + 2
    # Pad W so each parity plane has a sublane-aligned width (free reshapes in
    # the kernel); the extra columns are zeros and never reach valid outputs.
    Wpad = _round_up(Wraw, 8 * stride)
    Wps = Wpad // stride
    # TODO(synk): this pad/parity repack is one extra HBM round trip of the
    #             conv1 activations (for stride==1 the transpose is a no-op).
    hp = jnp.pad(h_nhwc, ((0, 0), (1, 1), (1, Wpad - Wraw + 1), (0, 0)))
    hp = hp.reshape(N, Hp, Wps, stride, Cp).transpose(0, 1, 3, 2, 4)

    w2_packed = w2_packed.astype(jnp.bfloat16)
    b2 = b2.reshape(1, Cp).astype(jnp.float32)

    kernel = partial(_conv3x3_kernel, stride=stride, wo=wo)
    return pl.pallas_call(
        kernel,
        out_shape=jax.ShapeDtypeStruct((N, ho, wo, Cp), jnp.bfloat16),
        grid=(ho, 3),
        in_specs=[
            # one padded input row across the whole batch -> matmul M = N*wo
            pl.BlockSpec((N, None, stride, Wps, Cp),
                         lambda y, dy: (0, y * stride + dy, 0, 0, 0)),
            # grid-invariant tap weights: constant index_map => fetched once,
            # kept resident; dy is sliced inside the kernel.
            pl.BlockSpec((3, Cp, 3 * Cp), lambda y, dy: (0, 0, 0)),
            pl.BlockSpec((1, Cp), lambda y, dy: (0, 0)),
        ],
        out_specs=pl.BlockSpec((N, None, wo, Cp), lambda y, dy: (0, y, 0, 0)),
        scratch_shapes=[pltpu.VMEM((N * Wps, Cp), jnp.float32)],
        compiler_params=pltpu.CompilerParams(
            dimension_semantics=("parallel", "arbitrary"),
            vmem_limit_bytes=_VMEM_LIMIT),
    )(hp, w2_packed, b2)


# ---------------------------------------------------------------------------
# Bottleneck forward (wrapper around the fused Pallas kernels)
# ---------------------------------------------------------------------------
def bottleneck_forward(x_nchw, kp, stride, out_planes):
    # bf16 before the layout change: the NCHW->NHWC transpose moves half bytes.
    x = jnp.transpose(x_nchw.astype(jnp.bfloat16), (0, 2, 3, 1))
    N, H, W, cin = x.shape
    Pp = kp["w1"].shape[1]      # padded `planes`
    Op = kp["w3"].shape[1]      # padded `4*planes`

    # conv1 (1x1) + bn1 + relu  -> bf16 activations
    h1 = matmul_bias_act(x.reshape(-1, cin), kp["w1"], kp["b1"],
                         relu=True, out_dtype=jnp.bfloat16)
    h1 = h1.reshape(N, H, W, Pp)

    # conv2 (3x3, stride, pad=1) + bn2 + relu, fully fused (no im2col)
    h2 = conv3x3_bn_relu(h1, kp["w2"], kp["b2"], stride)
    _, ho, wo, _ = h2.shape

    # shortcut: 1x1 strided conv + bn when shapes change, else identity (bf16)
    if stride != 1 or cin != out_planes:
        xs = x[:, ::stride, ::stride, :].reshape(-1, cin)
        res = matmul_bias_act(xs, kp["wsc"], kp["bsc"],
                              relu=False, out_dtype=jnp.bfloat16)
    else:
        res = x.reshape(-1, cin)
        if Op != cin:
            res = jnp.pad(res, ((0, 0), (0, Op - cin)))

    # conv3 (1x1) + bn3 + residual add + relu (fully fused, bf16 output stream)
    h3 = matmul_bias_act(h2.reshape(-1, Pp), kp["w3"], kp["b3"],
                         residual=res, relu=True, out_dtype=jnp.bfloat16)
    out = h3.reshape(N, ho, wo, Op)[..., :out_planes]
    # NHWC -> NCHW; the f32 cast fuses into the transpose copy.
    return jnp.transpose(out, (0, 3, 1, 2)).astype(jnp.float32)


# ---------------------------------------------------------------------------
# Parameters: base (conv weights + BN stats) and kernel-ready (folded/padded)
# ---------------------------------------------------------------------------
def make_base_params(key, inplanes, planes):
    out_planes = 4 * planes
    ks = iter(jax.random.split(key, 24))

    def bn(c):
        gamma = 1.0 + 0.1 * jax.random.normal(next(ks), (c,), jnp.float32)
        beta = 0.1 * jax.random.normal(next(ks), (c,), jnp.float32)
        mean = 0.1 * jax.random.normal(next(ks), (c,), jnp.float32)
        var = jnp.abs(jax.random.normal(next(ks), (c,), jnp.float32)) + 0.5
        return (gamma, beta, mean, var)

    base = {}
    base["w1"] = 0.2 * jax.random.normal(next(ks), (inplanes, planes), jnp.float32)
    base["bn1"] = bn(planes)
    base["w2"] = 0.2 * jax.random.normal(next(ks), (3, 3, planes, planes), jnp.float32)
    base["bn2"] = bn(planes)
    base["w3"] = 0.2 * jax.random.normal(next(ks), (planes, out_planes), jnp.float32)
    base["bn3"] = bn(out_planes)
    base["wsc"] = 0.2 * jax.random.normal(next(ks), (inplanes, out_planes), jnp.float32)
    base["bnsc"] = bn(out_planes)
    return base


def fold_and_pad_params(base, inplanes, planes, stride, eps=1e-5):
    """Fold BN scale into weight columns, cast to bf16, pad channels to 128."""
    out_planes = 4 * planes
    Pp = _round_up(planes, LANE)
    Op = _round_up(out_planes, LANE)

    def fold(bn):
        g, b, m, v = bn
        s = g * jax.lax.rsqrt(v + eps)
        return s, b - m * s

    s1, b1 = fold(base["bn1"]); s2, b2 = fold(base["bn2"])
    s3, b3 = fold(base["bn3"]); ssc, bsc = fold(base["bnsc"])

    def padc(a, n):
        return jnp.pad(a, [(0, 0)] * (a.ndim - 1) + [(0, n - a.shape[-1])])

    kp = {}
    kp["w1"] = padc(base["w1"] * s1, Pp).astype(jnp.bfloat16)
    kp["b1"] = padc(b1, Pp)
    # 3x3 weights: fold BN scale, pad ci/co to Pp, and per dy N-concatenate the
    # dx taps grouped by W-parity plane -> (3, Pp, 3*Pp).  This feeds one wide
    # (rows, Pp) x (Pp, taps*Pp) matmul per parity plane inside the kernel.
    w2 = jnp.pad(base["w2"] * s2,
                 ((0, 0), (0, 0), (0, Pp - planes), (0, Pp - planes)))
    order = [dx for p in range(stride) for dx in range(3) if dx % stride == p]
    kp["w2"] = jnp.concatenate([w2[:, dx] for dx in order],
                               axis=-1).astype(jnp.bfloat16)    # (3, Pp, 3*Pp)
    kp["b2"] = padc(b2, Pp)
    kp["w3"] = jnp.pad(base["w3"] * s3,
                       ((0, Pp - planes), (0, Op - out_planes))).astype(jnp.bfloat16)
    kp["b3"] = padc(b3, Op)
    kp["wsc"] = padc(base["wsc"] * ssc, Op).astype(jnp.bfloat16)
    kp["bsc"] = padc(bsc, Op)
    return kp


# ---------------------------------------------------------------------------
# Pure-JAX reference with matching numerics (bf16 operands, f32 accumulate)
# ---------------------------------------------------------------------------
def bottleneck_reference(x_nchw, base, stride, eps=1e-5):
    x = jnp.transpose(x_nchw, (0, 2, 3, 1)).astype(jnp.float32)
    cin = x.shape[-1]
    planes = base["w1"].shape[-1]
    out_planes = 4 * planes

    def fold(bn):
        g, b, m, v = bn
        s = g * jax.lax.rsqrt(v + eps)
        return s, b - m * s

    s1, b1 = fold(base["bn1"]); s2, b2 = fold(base["bn2"])
    s3, b3 = fold(base["bn3"])

    def conv(inp, w_hwio, strides, padding):
        return jax.lax.conv_general_dilated(
            inp.astype(jnp.bfloat16), w_hwio.astype(jnp.bfloat16),
            strides, padding, dimension_numbers=("NHWC", "HWIO", "NHWC"),
            preferred_element_type=jnp.float32)

    h = conv(x, base["w1"].reshape(1, 1, cin, planes) * s1, (1, 1), ((0, 0), (0, 0)))
    h = jnp.maximum(h + b1, 0.0).astype(jnp.bfloat16).astype(jnp.float32)
    h = conv(h, base["w2"] * s2, (stride, stride), ((1, 1), (1, 1)))
    h = jnp.maximum(h + b2, 0.0).astype(jnp.bfloat16).astype(jnp.float32)
    h = conv(h, base["w3"].reshape(1, 1, planes, out_planes) * s3,
             (1, 1), ((0, 0), (0, 0))) + b3
    if stride != 1 or cin != out_planes:
        ssc, bsc = fold(base["bnsc"])
        sc = conv(x, base["wsc"].reshape(1, 1, cin, out_planes) * ssc,
                  (stride, stride), ((0, 0), (0, 0))) + bsc
    else:
        sc = x
    return jnp.transpose(jnp.maximum(h + sc, 0.0), (0, 3, 1, 2))


# ---------------------------------------------------------------------------
if __name__ == "__main__":
    def run_case(name, N, inplanes, H, W, planes, stride, key):
        k_x, k_p = jax.random.split(key)
        out_planes = 4 * planes
        x = jax.random.normal(k_x, (N, inplanes, H, W), jnp.float32)   # NCHW
        base = make_base_params(k_p, inplanes, planes)
        kp = fold_and_pad_params(base, inplanes, planes, stride)

        fwd = jax.jit(partial(bottleneck_forward, stride=stride,
                              out_planes=out_planes))
        out = jax.block_until_ready(fwd(x, kp))
        ref = jax.block_until_ready(bottleneck_reference(x, base, stride))

        ho = (H - 1) // stride + 1
        wo = (W - 1) // stride + 1
        assert out.shape == ref.shape == (N, out_planes, ho, wo), \
            (name, out.shape, ref.shape)
        max_err = jnp.max(jnp.abs(out - ref))
        assert jnp.allclose(out, ref, rtol=2e-2, atol=2e-2), \
            f"{name}: max abs diff {max_err}"

    key = jax.random.PRNGKey(0)
    k1, k2 = jax.random.split(key)
    # projection shortcut + strided 3x3 conv
    run_case("stride2_projection", 2, 16, 8, 8, 8, 2, k1)
    # identity shortcut + stride-1 3x3 conv (previously untested branches)
    run_case("stride1_identity", 2, 32, 8, 8, 8, 1, k2)

    print("KERNEL_OK")
</pallas_src>

<mosaic_0001>
module attributes {stable_mosaic.version = 11 : i64} {
  func.func @_mm_bias_kernel(%arg0: i32, %arg1: i32, %arg2: i32, %arg3: memref<128x16xbf16, #tpu.memory_space<vmem>>, %arg4: memref<16x128xbf16, #tpu.memory_space<vmem>>, %arg5: memref<1x128xf32, #tpu.memory_space<vmem>>, %arg6: memref<128x128xbf16, #tpu.memory_space<vmem>>, %arg7: memref<128x128xf32, #tpu.memory_space<vmem>>) attributes {dimension_semantics = [#tpu.dimension_semantics<parallel>, #tpu.dimension_semantics<parallel>, #tpu.dimension_semantics<arbitrary>], iteration_bounds = array<i64: 1, 1, 1>, scalar_prefetch = 0 : i64, scratch_operands = 1 : i64, tpu.core_type = #tpu.core_type<tc>, window_params = [{transform_indices = @transform_0, window_bounds = array<i64: 128, 16>}, {transform_indices = @transform_1, window_bounds = array<i64: 16, 128>}, {transform_indices = @transform_2, window_bounds = array<i64: 1, 128>}, {transform_indices = @transform_3, window_bounds = array<i64: 128, 128>}]} {
    %c0_i32 = arith.constant 0 : i32
    %0 = arith.cmpi eq, %arg2, %c0_i32 : i32
    %1 = arith.extui %0 : i1 to i32
    %c0_i32_0 = arith.constant 0 : i32
    %2 = arith.cmpi ne, %1, %c0_i32_0 : i32
    scf.if %2 {
      %cst_10 = arith.constant 0.000000e+00 : f32
      %12 = vector.broadcast %cst_10 : f32 to vector<128x128xf32>
      %c0_11 = arith.constant 0 : index
      %c0_12 = arith.constant 0 : index
      %13 = vector.load %arg7[%c0_11, %c0_12] : memref<128x128xf32, #tpu.memory_space<vmem>>, vector<128x128xf32>
      tpu.vector_store %arg7[%c0_11, %c0_12], %12 {strides = array<i32>} : memref<128x128xf32, #tpu.memory_space<vmem>>, vector<128x128xf32>,
    } else {
    }
    %c0 = arith.constant 0 : index
    %c0_1 = arith.constant 0 : index
    %3 = vector.load %arg7[%c0, %c0_1] : memref<128x128xf32, #tpu.memory_space<vmem>>, vector<128x128xf32>
    %c0_2 = arith.constant 0 : index
    %c0_3 = arith.constant 0 : index
    %4 = vector.load %arg3[%c0_2, %c0_3] : memref<128x16xbf16, #tpu.memory_space<vmem>>, vector<128x16xbf16>
    %c0_4 = arith.constant 0 : index
    %c0_5 = arith.constant 0 : index
    %5 = vector.load %arg4[%c0_4, %c0_5] : memref<16x128xbf16, #tpu.memory_space<vmem>>, vector<16x128xbf16>
    %cst = arith.constant dense<0.000000e+00> : vector<128x128xf32>
    %6 = tpu.matmul %4, %5, %cst {dimension_numbers = #tpu.dot_dimension_numbers<[1], [0], [0], [1], [0, 0, 1, 1], [], []>} : vector<128x16xbf16>, vector<16x128xbf16>, vector<128x128xf32> -> vector<128x128xf32>
    %7 = arith.addf %3, %6 : vector<128x128xf32>
    %c0_6 = arith.constant 0 : index
    %c0_7 = arith.constant 0 : index
    %8 = vector.load %arg7[%c0_6, %c0_7] : memref<128x128xf32, #tpu.memory_space<vmem>>, vector<128x128xf32>
    tpu.vector_store %arg7[%c0_6, %c0_7], %7 {strides = array<i32>} : memref<128x128xf32, #tpu.memory_space<vmem>>, vector<128x128xf32>,
    %c0_i32_8 = arith.constant 0 : i32
    %9 = arith.cmpi eq, %arg2, %c0_i32_8 : i32
    %10 = arith.extui %9 : i1 to i32
    %c0_i32_9 = arith.constant 0 : i32
    %11 = arith.cmpi ne, %10, %c0_i32_9 : i32
    scf.if %11 {
      %c0_10 = arith.constant 0 : index
      %c0_11 = arith.constant 0 : index
      %12 = vector.load %arg7[%c0_10, %c0_11] : memref<128x128xf32, #tpu.memory_space<vmem>>, vector<128x128xf32>
      %c0_12 = arith.constant 0 : index
      %c0_13 = arith.constant 0 : index
      %13 = vector.load %arg5[%c0_12, %c0_13] : memref<1x128xf32, #tpu.memory_space<vmem>>, vector<1x128xf32>
      %14 = vector.broadcast %13 : vector<1x128xf32> to vector<128x128xf32>
      %15 = arith.addf %12, %14 : vector<128x128xf32>
      %cst_14 = arith.constant 0.000000e+00 : f32
      %16 = vector.broadcast %cst_14 : f32 to vector<128x128xf32>
      %17 = arith.maximumf %15, %16 : vector<128x128xf32>
      %18 = arith.truncf %17 : vector<128x128xf32> to vector<128x128xbf16>
      %c0_15 = arith.constant 0 : index
      %c0_16 = arith.constant 0 : index
      %19 = vector.load %arg6[%c0_15, %c0_16] : memref<128x128xbf16, #tpu.memory_space<vmem>>, vector<128x128xbf16>
      tpu.vector_store %arg6[%c0_15, %c0_16], %18 {strides = array<i32>} : memref<128x128xbf16, #tpu.memory_space<vmem>>, vector<128x128xbf16>,
    } else {
    }
    return
  }
  func.func @transform_0(%arg0: i32, %arg1: i32, %arg2: i32) -> (i32, i32) {
    %c0_i32 = arith.constant 0 : i32
    return %arg0, %arg2 : i32, i32
  }
  func.func @transform_1(%arg0: i32, %arg1: i32, %arg2: i32) -> (i32, i32) {
    %c0_i32 = arith.constant 0 : i32
    return %arg2, %arg1 : i32, i32
  }
  func.func @transform_2(%arg0: i32, %arg1: i32, %arg2: i32) -> (i32, i32) {
    %c0_i32 = arith.constant 0 : i32
    %c0_i32_0 = arith.constant 0 : i32
    return %c0_i32, %arg1 : i32, i32
  }
  func.func @transform_3(%arg0: i32, %arg1: i32, %arg2: i32) -> (i32, i32) {
    %c0_i32 = arith.constant 0 : i32
    return %arg0, %arg1 : i32, i32
  }
}

module attributes {stable_mosaic.version = 11 : i64} {
  func.func @_conv3x3_kernel(%arg0: i32, %arg1: i32, %arg2: memref<2x1x2x8x128xbf16, #tpu.memory_space<vmem>>, %arg3: memref<3x128x384xbf16, #tpu.memory_space<vmem>>, %arg4: memref<1x128xf32, #tpu.memory_space<vmem>>, %arg5: memref<2x1x4x128xbf16, #tpu.memory_space<vmem>>, %arg6: memref<16x128xf32, #tpu.memory_space<vmem>>) attributes {dimension_semantics = [#tpu.dimension_semantics<parallel>, #tpu.dimension_semantics<arbitrary>], iteration_bounds = array<i64: 4, 3>, scalar_prefetch = 0 : i64, scratch_operands = 1 : i64, tpu.core_type = #tpu.core_type<tc>, window_params = [{transform_indices = @transform_0, window_bounds = array<i64: 2, 1, 2, 8, 128>}, {pipeline_mode = #tpu.pipeline_mode<synchronous>, transform_indices = @transform_1, window_bounds = array<i64: 3, 128, 384>}, {pipeline_mode = #tpu.pipeline_mode<synchronous>, transform_indices = @transform_2, window_bounds = array<i64: 1, 128>}, {transform_indices = @transform_3, window_bounds = array<i64: 2, 1, 4, 128>}]} {
    %c0_i32 = arith.constant 0 : i32
    %0 = arith.cmpi eq, %arg1, %c0_i32 : i32
    %1 = arith.extui %0 : i1 to i32
    %c0_i32_0 = arith.constant 0 : i32
    %2 = arith.cmpi ne, %1, %c0_i32_0 : i32
    scf.if %2 {
      %cst_13 = arith.constant 0.000000e+00 : f32
      %29 = vector.broadcast %cst_13 : f32 to vector<16x128xf32>
      %c0_14 = arith.constant 0 : index
      %c0_15 = arith.constant 0 : index
      %30 = vector.load %arg6[%c0_14, %c0_15] : memref<16x128xf32, #tpu.memory_space<vmem>>, vector<16x128xf32>
      tpu.vector_store %arg6[%c0_14, %c0_15], %29 {strides = array<i32>} : memref<16x128xf32, #tpu.memory_space<vmem>>, vector<16x128xf32>,
    } else {
    }
    %c0 = arith.constant 0 : index
    %c0_1 = arith.constant 0 : index
    %c0_2 = arith.constant 0 : index
    %c0_3 = arith.constant 0 : index
    %c0_4 = arith.constant 0 : index
    %3 = vector.load %arg2[%c0, %c0_1, %c0_2, %c0_3, %c0_4] : memref<2x1x2x8x128xbf16, #tpu.memory_space<vmem>>, vector<2x1x2x8x128xbf16>
    %4 = vector.shape_cast %3 : vector<2x1x2x8x128xbf16> to vector<2x2x8x128xbf16>
    %5 = arith.index_cast %arg1 : i32 to index
    %c0_5 = arith.constant 0 : index
    %c0_6 = arith.constant 0 : index
    %6 = vector.load %arg3[%5, %c0_5, %c0_6] : memref<3x128x384xbf16, #tpu.memory_space<vmem>>, vector<1x128x384xbf16>
    %7 = vector.shape_cast %6 : vector<1x128x384xbf16> to vector<128x384xbf16>
    %8 = vector.extract_strided_slice %4 {offsets = [0, 0, 0, 0], sizes = [2, 1, 8, 128], strides = [1, 1, 1, 1]} : vector<2x2x8x128xbf16> to vector<2x1x8x128xbf16>
    %9 = vector.shape_cast %8 : vector<2x1x8x128xbf16> to vector<2x8x128xbf16>
    %10 = vector.shape_cast %9 : vector<2x8x128xbf16> to vector<16x128xbf16>
    %11 = vector.extract_strided_slice %7 {offsets = [0, 0], sizes = [128, 256], strides = [1, 1]} : vector<128x384xbf16> to vector<128x256xbf16>
    %cst = arith.constant dense<0.000000e+00> : vector<16x256xf32>
    %12 = tpu.matmul %10, %11, %cst {dimension_numbers = #tpu.dot_dimension_numbers<[1], [0], [0], [1], [0, 0, 1, 1], [], []>} : vector<16x128xbf16>, vector<128x256xbf16>, vector<16x256xf32> -> vector<16x256xf32>
    %13 = vector.extract_strided_slice %12 {offsets = [0, 0], sizes = [16, 128], strides = [1, 1]} : vector<16x256xf32> to vector<16x128xf32>
    %14 = vector.extract_strided_slice %12 {offsets = [0, 128], sizes = [16, 128], strides = [1, 1]} : vector<16x256xf32> to vector<16x128xf32>
    %c15_i32 = arith.constant 15 : i32
    %15 = tpu.dynamic_rotate %14 by %c15_i32 dim 0 : vector<16x128xf32>, i32 -> vector<16x128xf32>
    %16 = arith.addf %13, %15 : vector<16x128xf32>
    %17 = vector.extract_strided_slice %4 {offsets = [0, 1, 0, 0], sizes = [2, 1, 8, 128], strides = [1, 1, 1, 1]} : vector<2x2x8x128xbf16> to vector<2x1x8x128xbf16>
    %18 = vector.shape_cast %17 : vector<2x1x8x128xbf16> to vector<2x8x128xbf16>
    %19 = vector.shape_cast %18 : vector<2x8x128xbf16> to vector<16x128xbf16>
    %20 = vector.extract_strided_slice %7 {offsets = [0, 256], sizes = [128, 128], strides = [1, 1]} : vector<128x384xbf16> to vector<128x128xbf16>
    %cst_7 = arith.constant dense<0.000000e+00> : vector<16x128xf32>
    %21 = tpu.matmul %19, %20, %cst_7 {dimension_numbers = #tpu.dot_dimension_numbers<[1], [0], [0], [1], [0, 0, 1, 1], [], []>} : vector<16x128xbf16>, vector<128x128xbf16>, vector<16x128xf32> -> vector<16x128xf32>
    %22 = arith.addf %16, %21 : vector<16x128xf32>
    %c0_8 = arith.constant 0 : index
    %c0_9 = arith.constant 0 : index
    %23 = vector.load %arg6[%c0_8, %c0_9] : memref<16x128xf32, #tpu.memory_space<vmem>>, vector<16x128xf32>
    %24 = arith.addf %23, %22 : vector<16x128xf32>
    %c0_10 = arith.constant 0 : index
    %c0_11 = arith.constant 0 : index
    %25 = vector.load %arg6[%c0_10, %c0_11] : memref<16x128xf32, #tpu.memory_space<vmem>>, vector<16x128xf32>
    tpu.vector_store %arg6[%c0_10, %c0_11], %24 {strides = array<i32>} : memref<16x128xf32, #tpu.memory_space<vmem>>, vector<16x128xf32>,
    %c2_i32 = arith.constant 2 : i32
    %26 = arith.cmpi eq, %arg1, %c2_i32 : i32
    %27 = arith.extui %26 : i1 to i32
    %c0_i32_12 = arith.constant 0 : i32
    %28 = arith.cmpi ne, %27, %c0_i32_12 : i32
    scf.if %28 {
      %c0_13 = arith.constant 0 : index
      %c0_14 = arith.constant 0 : index
      %29 = vector.load %arg6[%c0_13, %c0_14] : memref<16x128xf32, #tpu.memory_space<vmem>>, vector<16x128xf32>
      %c0_15 = arith.constant 0 : index
      %c0_16 = arith.constant 0 : index
      %30 = vector.load %arg4[%c0_15, %c0_16] : memref<1x128xf32, #tpu.memory_space<vmem>>, vector<1x128xf32>
      %31 = vector.broadcast %30 : vector<1x128xf32> to vector<16x128xf32>
      %32 = arith.addf %29, %31 : vector<16x128xf32>
      %cst_17 = arith.constant 0.000000e+00 : f32
      %33 = vector.broadcast %cst_17 : f32 to vector<16x128xf32>
      %34 = arith.maximumf %32, %33 : vector<16x128xf32>
      %35 = vector.shape_cast %34 : vector<16x128xf32> to vector<2x8x128xf32>
      %36 = vector.extract_strided_slice %35 {offsets = [0, 0, 0], sizes = [2, 4, 128], strides = [1, 1, 1]} : vector<2x8x128xf32> to vector<2x4x128xf32>
      %37 = arith.truncf %36 : vector<2x4x128xf32> to vector<2x4x128xbf16>
      %c0_18 = arith.constant 0 : index
      %c0_19 = arith.constant 0 : index
      %c0_20 = arith.constant 0 : index
      %c0_21 = arith.constant 0 : index
      %38 = vector.load %arg5[%c0_18, %c0_19, %c0_20, %c0_21] : memref<2x1x4x128xbf16, #tpu.memory_space<vmem>>, vector<2x1x4x128xbf16>
      %39 = vector.shape_cast %38 : vector<2x1x4x128xbf16> to vector<2x4x128xbf16>
      %40 = vector.shape_cast %37 : vector<2x4x128xbf16> to vector<2x1x4x128xbf16>
      tpu.vector_store %arg5[%c0_18, %c0_19, %c0_20, %c0_21], %40 {strides = array<i32>} : memref<2x1x4x128xbf16, #tpu.memory_space<vmem>>, vector<2x1x4x128xbf16>,
    } else {
    }
    return
  }
  func.func @transform_0(%arg0: i32, %arg1: i32) -> (i32, i32, i32, i32, i32) {
    %c2_i32 = arith.constant 2 : i32
    %0 = arith.muli %arg0, %c2_i32 : i32
    %1 = arith.addi %0, %arg1 : i32
    %c0_i32 = arith.constant 0 : i32
    %c0_i32_0 = arith.constant 0 : i32
    %c0_i32_1 = arith.constant 0 : i32
    %c0_i32_2 = arith.constant 0 : i32
    %c0_i32_3 = arith.constant 0 : i32
    return %c0_i32, %1, %c0_i32_0, %c0_i32_1, %c0_i32_2 : i32, i32, i32, i32, i32
  }
  func.func @transform_1(%arg0: i32, %arg1: i32) -> (i32, i32, i32) {
    %c0_i32 = arith.constant 0 : i32
    %c0_i32_0 = arith.constant 0 : i32
    %c0_i32_1 = arith.constant 0 : i32
    %c0_i32_2 = arith.constant 0 : i32
    return %c0_i32, %c0_i32_0, %c0_i32_1 : i32, i32, i32
  }
  func.func @transform_2(%arg0: i32, %arg1: i32) -> (i32, i32) {
    %c0_i32 = arith.constant 0 : i32
    %c0_i32_0 = arith.constant 0 : i32
    %c0_i32_1 = arith.constant 0 : i32
    return %c0_i32, %c0_i32_0 : i32, i32
  }
  func.func @transform_3(%arg0: i32, %arg1: i32) -> (i32, i32, i32, i32) {
    %c0_i32 = arith.constant 0 : i32
    %c0_i32_0 = arith.constant 0 : i32
    %c0_i32_1 = arith.constant 0 : i32
    %c0_i32_2 = arith.constant 0 : i32
    return %c0_i32, %arg0, %c0_i32_0, %c0_i32_1 : i32, i32, i32, i32
  }
}

module attributes {stable_mosaic.version = 11 : i64} {
  func.func @_mm_bias_kernel(%arg0: i32, %arg1: i32, %arg2: i32, %arg3: memref<32x16xbf16, #tpu.memory_space<vmem>>, %arg4: memref<16x128xbf16, #tpu.memory_space<vmem>>, %arg5: memref<1x128xf32, #tpu.memory_space<vmem>>, %arg6: memref<32x128xbf16, #tpu.memory_space<vmem>>, %arg7: memref<32x128xf32, #tpu.memory_space<vmem>>) attributes {dimension_semantics = [#tpu.dimension_semantics<parallel>, #tpu.dimension_semantics<parallel>, #tpu.dimension_semantics<arbitrary>], iteration_bounds = array<i64: 1, 1, 1>, scalar_prefetch = 0 : i64, scratch_operands = 1 : i64, tpu.core_type = #tpu.core_type<tc>, window_params = [{transform_indices = @transform_0, window_bounds = array<i64: 32, 16>}, {transform_indices = @transform_1, window_bounds = array<i64: 16, 128>}, {transform_indices = @transform_2, window_bounds = array<i64: 1, 128>}, {transform_indices = @transform_3, window_bounds = array<i64: 32, 128>}]} {
    %c0_i32 = arith.constant 0 : i32
    %0 = arith.cmpi eq, %arg2, %c0_i32 : i32
    %1 = arith.extui %0 : i1 to i32
    %c0_i32_0 = arith.constant 0 : i32
    %2 = arith.cmpi ne, %1, %c0_i32_0 : i32
    scf.if %2 {
      %cst_10 = arith.constant 0.000000e+00 : f32
      %12 = vector.broadcast %cst_10 : f32 to vector<32x128xf32>
      %c0_11 = arith.constant 0 : index
      %c0_12 = arith.constant 0 : index
      %13 = vector.load %arg7[%c0_11, %c0_12] : memref<32x128xf32, #tpu.memory_space<vmem>>, vector<32x128xf32>
      tpu.vector_store %arg7[%c0_11, %c0_12], %12 {strides = array<i32>} : memref<32x128xf32, #tpu.memory_space<vmem>>, vector<32x128xf32>,
    } else {
    }
    %c0 = arith.constant 0 : index
    %c0_1 = arith.constant 0 : index
    %3 = vector.load %arg7[%c0, %c0_1] : memref<32x128xf32, #tpu.memory_space<vmem>>, vector<32x128xf32>
    %c0_2 = arith.constant 0 : index
    %c0_3 = arith.constant 0 : index
    %4 = vector.load %arg3[%c0_2, %c0_3] : memref<32x16xbf16, #tpu.memory_space<vmem>>, vector<32x16xbf16>
    %c0_4 = arith.constant 0 : index
    %c0_5 = arith.constant 0 : index
    %5 = vector.load %arg4[%c0_4, %c0_5] : memref<16x128xbf16, #tpu.memory_space<vmem>>, vector<16x128xbf16>
    %cst = arith.constant dense<0.000000e+00> : vector<32x128xf32>
    %6 = tpu.matmul %4, %5, %cst {dimension_numbers = #tpu.dot_dimension_numbers<[1], [0], [0], [1], [0, 0, 1, 1], [], []>} : vector<32x16xbf16>, vector<16x128xbf16>, vector<32x128xf32> -> vector<32x128xf32>
    %7 = arith.addf %3, %6 : vector<32x128xf32>
    %c0_6 = arith.constant 0 : index
    %c0_7 = arith.constant 0 : index
    %8 = vector.load %arg7[%c0_6, %c0_7] : memref<32x128xf32, #tpu.memory_space<vmem>>, vector<32x128xf32>
    tpu.vector_store %arg7[%c0_6, %c0_7], %7 {strides = array<i32>} : memref<32x128xf32, #tpu.memory_space<vmem>>, vector<32x128xf32>,
    %c0_i32_8 = arith.constant 0 : i32
    %9 = arith.cmpi eq, %arg2, %c0_i32_8 : i32
    %10 = arith.extui %9 : i1 to i32
    %c0_i32_9 = arith.constant 0 : i32
    %11 = arith.cmpi ne, %10, %c0_i32_9 : i32
    scf.if %11 {
      %c0_10 = arith.constant 0 : index
      %c0_11 = arith.constant 0 : index
      %12 = vector.load %arg7[%c0_10, %c0_11] : memref<32x128xf32, #tpu.memory_space<vmem>>, vector<32x128xf32>
      %c0_12 = arith.constant 0 : index
      %c0_13 = arith.constant 0 : index
      %13 = vector.load %arg5[%c0_12, %c0_13] : memref<1x128xf32, #tpu.memory_space<vmem>>, vector<1x128xf32>
      %14 = vector.broadcast %13 : vector<1x128xf32> to vector<32x128xf32>
      %15 = arith.addf %12, %14 : vector<32x128xf32>
      %16 = arith.truncf %15 : vector<32x128xf32> to vector<32x128xbf16>
      %c0_14 = arith.constant 0 : index
      %c0_15 = arith.constant 0 : index
      %17 = vector.load %arg6[%c0_14, %c0_15] : memref<32x128xbf16, #tpu.memory_space<vmem>>, vector<32x128xbf16>
      tpu.vector_store %arg6[%c0_14, %c0_15], %16 {strides = array<i32>} : memref<32x128xbf16, #tpu.memory_space<vmem>>, vector<32x128xbf16>,
    } else {
    }
    return
  }
  func.func @transform_0(%arg0: i32, %arg1: i32, %arg2: i32) -> (i32, i32) {
    %c0_i32 = arith.constant 0 : i32
    return %arg0, %arg2 : i32, i32
  }
  func.func @transform_1(%arg0: i32, %arg1: i32, %arg2: i32) -> (i32, i32) {
    %c0_i32 = arith.constant 0 : i32
    return %arg2, %arg1 : i32, i32
  }
  func.func @transform_2(%arg0: i32, %arg1: i32, %arg2: i32) -> (i32, i32) {
    %c0_i32 = arith.constant 0 : i32
    %c0_i32_0 = arith.constant 0 : i32
    return %c0_i32, %arg1 : i32, i32
  }
  func.func @transform_3(%arg0: i32, %arg1: i32, %arg2: i32) -> (i32, i32) {
    %c0_i32 = arith.constant 0 : i32
    return %arg0, %arg1 : i32, i32
  }
}

module attributes {stable_mosaic.version = 11 : i64} {
  func.func @_mm_bias_kernel(%arg0: i32, %arg1: i32, %arg2: i32, %arg3: memref<32x128xbf16, #tpu.memory_space<vmem>>, %arg4: memref<128x128xbf16, #tpu.memory_space<vmem>>, %arg5: memref<1x128xf32, #tpu.memory_space<vmem>>, %arg6: memref<32x128xbf16, #tpu.memory_space<vmem>>, %arg7: memref<32x128xbf16, #tpu.memory_space<vmem>>, %arg8: memref<32x128xf32, #tpu.memory_space<vmem>>) attributes {dimension_semantics = [#tpu.dimension_semantics<parallel>, #tpu.dimension_semantics<parallel>, #tpu.dimension_semantics<arbitrary>], iteration_bounds = array<i64: 1, 1, 1>, scalar_prefetch = 0 : i64, scratch_operands = 1 : i64, tpu.core_type = #tpu.core_type<tc>, window_params = [{transform_indices = @transform_0, window_bounds = array<i64: 32, 128>}, {transform_indices = @transform_1, window_bounds = array<i64: 128, 128>}, {transform_indices = @transform_2, window_bounds = array<i64: 1, 128>}, {transform_indices = @transform_3, window_bounds = array<i64: 32, 128>}, {transform_indices = @transform_4, window_bounds = array<i64: 32, 128>}]} {
    %c0_i32 = arith.constant 0 : i32
    %0 = arith.cmpi eq, %arg2, %c0_i32 : i32
    %1 = arith.extui %0 : i1 to i32
    %c0_i32_0 = arith.constant 0 : i32
    %2 = arith.cmpi ne, %1, %c0_i32_0 : i32
    scf.if %2 {
      %cst_10 = arith.constant 0.000000e+00 : f32
      %12 = vector.broadcast %cst_10 : f32 to vector<32x128xf32>
      %c0_11 = arith.constant 0 : index
      %c0_12 = arith.constant 0 : index
      %13 = vector.load %arg8[%c0_11, %c0_12] : memref<32x128xf32, #tpu.memory_space<vmem>>, vector<32x128xf32>
      tpu.vector_store %arg8[%c0_11, %c0_12], %12 {strides = array<i32>} : memref<32x128xf32, #tpu.memory_space<vmem>>, vector<32x128xf32>,
    } else {
    }
    %c0 = arith.constant 0 : index
    %c0_1 = arith.constant 0 : index
    %3 = vector.load %arg8[%c0, %c0_1] : memref<32x128xf32, #tpu.memory_space<vmem>>, vector<32x128xf32>
    %c0_2 = arith.constant 0 : index
    %c0_3 = arith.constant 0 : index
    %4 = vector.load %arg3[%c0_2, %c0_3] : memref<32x128xbf16, #tpu.memory_space<vmem>>, vector<32x128xbf16>
    %c0_4 = arith.constant 0 : index
    %c0_5 = arith.constant 0 : index
    %5 = vector.load %arg4[%c0_4, %c0_5] : memref<128x128xbf16, #tpu.memory_space<vmem>>, vector<128x128xbf16>
    %cst = arith.constant dense<0.000000e+00> : vector<32x128xf32>
    %6 = tpu.matmul %4, %5, %cst {dimension_numbers = #tpu.dot_dimension_numbers<[1], [0], [0], [1], [0, 0, 1, 1], [], []>} : vector<32x128xbf16>, vector<128x128xbf16>, vector<32x128xf32> -> vector<32x128xf32>
    %7 = arith.addf %3, %6 : vector<32x128xf32>
    %c0_6 = arith.constant 0 : index
    %c0_7 = arith.constant 0 : index
    %8 = vector.load %arg8[%c0_6, %c0_7] : memref<32x128xf32, #tpu.memory_space<vmem>>, vector<32x128xf32>
    tpu.vector_store %arg8[%c0_6, %c0_7], %7 {strides = array<i32>} : memref<32x128xf32, #tpu.memory_space<vmem>>, vector<32x128xf32>,
    %c0_i32_8 = arith.constant 0 : i32
    %9 = arith.cmpi eq, %arg2, %c0_i32_8 : i32
    %10 = arith.extui %9 : i1 to i32
    %c0_i32_9 = arith.constant 0 : i32
    %11 = arith.cmpi ne, %10, %c0_i32_9 : i32
    scf.if %11 {
      %c0_10 = arith.constant 0 : index
      %c0_11 = arith.constant 0 : index
      %12 = vector.load %arg8[%c0_10, %c0_11] : memref<32x128xf32, #tpu.memory_space<vmem>>, vector<32x128xf32>
      %c0_12 = arith.constant 0 : index
      %c0_13 = arith.constant 0 : index
      %13 = vector.load %arg5[%c0_12, %c0_13] : memref<1x128xf32, #tpu.memory_space<vmem>>, vector<1x128xf32>
      %14 = vector.broadcast %13 : vector<1x128xf32> to vector<32x128xf32>
      %15 = arith.addf %12, %14 : vector<32x128xf32>
      %c0_14 = arith.constant 0 : index
      %c0_15 = arith.constant 0 : index
      %16 = vector.load %arg6[%c0_14, %c0_15] : memref<32x128xbf16, #tpu.memory_space<vmem>>, vector<32x128xbf16>
      %17 = arith.extf %16 : vector<32x128xbf16> to vector<32x128xf32>
      %18 = arith.addf %15, %17 : vector<32x128xf32>
      %cst_16 = arith.constant 0.000000e+00 : f32
      %19 = vector.broadcast %cst_16 : f32 to vector<32x128xf32>
      %20 = arith.maximumf %18, %19 : vector<32x128xf32>
      %21 = arith.truncf %20 : vector<32x128xf32> to vector<32x128xbf16>
      %c0_17 = arith.constant 0 : index
      %c0_18 = arith.constant 0 : index
      %22 = vector.load %arg7[%c0_17, %c0_18] : memref<32x128xbf16, #tpu.memory_space<vmem>>, vector<32x128xbf16>
      tpu.vector_store %arg7[%c0_17, %c0_18], %21 {strides = array<i32>} : memref<32x128xbf16, #tpu.memory_space<vmem>>, vector<32x128xbf16>,
    } else {
    }
    return
  }
  func.func @transform_0(%arg0: i32, %arg1: i32, %arg2: i32) -> (i32, i32) {
    %c0_i32 = arith.constant 0 : i32
    return %arg0, %arg2 : i32, i32
  }
  func.func @transform_1(%arg0: i32, %arg1: i32, %arg2: i32) -> (i32, i32) {
    %c0_i32 = arith.constant 0 : i32
    return %arg2, %arg1 : i32, i32
  }
  func.func @transform_2(%arg0: i32, %arg1: i32, %arg2: i32) -> (i32, i32) {
    %c0_i32 = arith.constant 0 : i32
    %c0_i32_0 = arith.constant 0 : i32
    return %c0_i32, %arg1 : i32, i32
  }
  func.func @transform_3(%arg0: i32, %arg1: i32, %arg2: i32) -> (i32, i32) {
    %c0_i32 = arith.constant 0 : i32
    return %arg0, %arg1 : i32, i32
  }
  func.func @transform_4(%arg0: i32, %arg1: i32, %arg2: i32) -> (i32, i32) {
    %c0_i32 = arith.constant 0 : i32
    return %arg0, %arg1 : i32, i32
  }
}

</mosaic_0001>

<bundles_post_ra>
// kernel: bottleneck_forward.4
= control target key start
LH: loop header
LB: loop body
LE: loop exit
PB: predicated region body
PF: predicated region fallthrough
CT: control target
= control target key end

     0   :  { %vm115_vm0 = vcmask 130048   ;;  %s628_s1 = inlined_call_operand.vmem [shape: bf16[16,128], index: 1, kind: input, shape index: {}]   ;;  %s629_s0 = inlined_call_operand.vmem [shape: bf16[128,16], index: 0, kind: input, shape index: {}]   ;;  %s630_s2 = inlined_call_operand.vmem [shape: f32[1,128], index: 2, kind: input, shape index: {}]   ;;  %s631_s3 = inlined_call_operand.vmem [shape: bf16[128,128], index: 3, kind: output, shape index: {}]  }
   0x1   :  { %v537_v0 = vld [vmem:[%s628_s1] sm:$0xff]   ;;  %v540_v3 = vld [vmem:[%s629_s0 + $0x8] sm:$0xff]   ;;  %v542_v5 = vld [vmem:[%s629_s0 + $0x10] sm:$0xff]  }
   0x2   :  { %v538_v1 = vld [vmem:[%s629_s0] sm:$0xff]   ;;  %517 = vmatprep.subr.bf16.mxu0 %v537_v0  ;;  %535 = vmatprep.subr.bf16.mxu1 %v537_v0  ;;  %v541_v4 = vld [vmem:[%s629_s0 + $0x28] sm:$0xff]   ;;  %v543_v6 = vld [vmem:[%s629_s0 + $0x30] sm:$0xff]  }
   0x3   :  { %v539_v2 = vld [vmem:[%s629_s0 + $0x20] sm:$0xff]   ;;  %518 = vmatpush3.bf16.msra.mxu0 %v537_v0  ;;  %536 = vmatpush3.bf16.msra.mxu1 %v537_v0  ;;  %v544_v7 = vld [vmem:[%s629_s0 + $0x18] sm:$0xff]  }
   0x4   :  { %519 = vmatprep.mubr.msk.bf16.mxu0 %vm115_vm0, %v538_v1  ;;  %527 = vmatprep.mubr.msk.bf16.mxu1 %vm115_vm0, %v539_v2  ;;  %v545_v8 = vld [vmem:[%s629_s0 + $0x38] sm:$0xff]   ;;  %v428_v9 = vld [vmem:[%s630_s2] ss:$0 sm:$0xff] }
   0x6   :  { %520 = vmatmul.mubr.msk.bf16.vlgmr.msra.gmra.mrb[0].mxu0 %vm115_vm0, %v540_v3  ;;  %528 = vmatmul.mubr.msk.bf16.vlgmr.msra.gmra.mrb[0].mxu1 %vm115_vm0, %v541_v4 }
   0x7   :  { %523 = vmatprep.mubr.msk.bf16.mxu0 %vm115_vm0, %v542_v5  ;;  %531 = vmatprep.mubr.msk.bf16.mxu1 %vm115_vm0, %v543_v6 }
   0xe   :  { %524 = vmatmul.mubr.msk.bf16.gmra.mrb[4].mxu0 %vm115_vm0, %v544_v7  ;;  %532 = vmatmul.mubr.msk.bf16.gmra.mrb[4].mxu1 %vm115_vm0, %v545_v8 }
  0xd9   :  { %v521_v10 = vpop.f32.mrb[0].mxu0  ;;  %v529_v11 = vpop.f32.mrb[0].mxu1 }
  0xda   :  { %v297_v12 = vadd.f32 %v521_v10, %v428_v9  ;;  %v305_v13 = vadd.f32 %v529_v11, %v428_v9  ;;  %v174_v14 = vpop.f32.mrb[1].mxu0  ;;  %v206_v15 = vpop.f32.mrb[1].mxu1 }
  0xdb   :  { %v295_v16 = vadd.f32 %v428_v9, %v174_v14  ;;  %v303_v17 = vadd.f32 %v428_v9, %v206_v15  ;;  %v522_v18 = vpop.f32.mrb[2].mxu0  ;;  %v530_v19 = vpop.f32.mrb[2].mxu1 }
  0xdc   :  { %v298_v20 = vadd.f32 %v522_v18, %v428_v9  ;;  %v306_v21 = vadd.f32 %v530_v19, %v428_v9  ;;  %v177_v22 = vpop.f32.mrb[3].mxu0  ;;  %v209_v23 = vpop.f32.mrb[3].mxu1  ;;  %v313_v26 = vmax.f32 %v297_v12, 0.0  ;;  %v321_v27 = vmax.f32 %v305_v13, 0.0 }
  0xdd   :  { %v296_v24 = vadd.f32 %v428_v9, %v177_v22  ;;  %v304_v25 = vadd.f32 %v428_v9, %v209_v23  ;;  %v311_v30 = vmax.f32 %v295_v16, 0.0  ;;  %v319_v31 = vmax.f32 %v303_v17, 0.0 }
  0xde   :  { %v314_v28 = vmax.f32 %v298_v20, 0.0  ;;  %v322_v29 = vmax.f32 %v306_v21, 0.0 }
  0xdf   :  { %v312_v32 = vmax.f32 %v296_v24, 0.0  ;;  %v320_v33 = vmax.f32 %v304_v25, 0.0 }
  0xe0   :  { %v469_v34 = vpack.c.bf16 %v314_v28, %v313_v26  ;;  %v489_v35 = vpack.c.bf16 %v322_v29, %v321_v27 }
  0xe1   :  { %v464_v36 = vpack.c.bf16 %v312_v32, %v311_v30  ;;  %v484_v37 = vpack.c.bf16 %v320_v33, %v319_v31  ;;  %v525_v38 = vpop.f32.mrb[4].mxu0  ;;  %v533_v39 = vpop.f32.mrb[4].mxu1 }
  0xe2   :  { %501 = vst [vmem:[%s631_s3 + $0x8] sm:$0xff] %v469_v34   ;;  %505 = vst [vmem:[%s631_s3 + $0x28] sm:$0xff] %v489_v35   ;;  %v301_v40 = vadd.f32 %v525_v38, %v428_v9  ;;  %v309_v41 = vadd.f32 %v533_v39, %v428_v9  ;;  %v190_v42 = vpop.f32.mrb[5].mxu0  ;;  %v222_v43 = vpop.f32.mrb[5].mxu1 }
  0xe3   :  { %465 = vst [vmem:[%s631_s3] sm:$0xff] %v464_v36   ;;  %504 = vst [vmem:[%s631_s3 + $0x20] sm:$0xff] %v484_v37   ;;  %v299_v44 = vadd.f32 %v428_v9, %v190_v42  ;;  %v307_v45 = vadd.f32 %v428_v9, %v222_v43  ;;  %v526_v46 = vpop.f32.mrb[6].mxu0  ;;  %v534_v47 = vpop.f32.mrb[6].mxu1 }
  0xe4   :  { %v302_v48 = vadd.f32 %v526_v46, %v428_v9  ;;  %v310_v49 = vadd.f32 %v534_v47, %v428_v9  ;;  %v193_v50 = vpop.f32.mrb[7].mxu0  ;;  %v225_v51 = vpop.f32.mrb[7].mxu1  ;;  %v317_v54 = vmax.f32 %v301_v40, 0.0  ;;  %v325_v55 = vmax.f32 %v309_v41, 0.0 }
  0xe5   :  { %v300_v52 = vadd.f32 %v428_v9, %v193_v50  ;;  %v308_v53 = vadd.f32 %v428_v9, %v225_v51  ;;  %v315_v58 = vmax.f32 %v299_v44, 0.0  ;;  %v323_v59 = vmax.f32 %v307_v45, 0.0 }
  0xe6   :  { %v318_v56 = vmax.f32 %v302_v48, 0.0  ;;  %v326_v57 = vmax.f32 %v310_v49, 0.0 }
  0xe7   :  { %v316_v60 = vmax.f32 %v300_v52, 0.0  ;;  %v324_v61 = vmax.f32 %v308_v53, 0.0 }
  0xe8   :  { %v479_v62 = vpack.c.bf16 %v318_v56, %v317_v54  ;;  %v499_v63 = vpack.c.bf16 %v326_v57, %v325_v55 }
  0xe9   :  { %v474_v0 = vpack.c.bf16 %v316_v60, %v315_v58  ;;  %v494_v1 = vpack.c.bf16 %v324_v61, %v323_v59 }
  0xea   :  { %503 = vst [vmem:[%s631_s3 + $0x18] sm:$0xff] %v479_v62   ;;  %507 = vst [vmem:[%s631_s3 + $0x38] sm:$0xff] %v499_v63  }
  0xeb   :  { %502 = vst [vmem:[%s631_s3 + $0x10] sm:$0xff] %v474_v0   ;;  %506 = vst [vmem:[%s631_s3 + $0x30] sm:$0xff] %v494_v1  }

// kernel: bottleneck_forward.6
= control target key start
LH: loop header
LB: loop body
LE: loop exit
PB: predicated region body
PF: predicated region fallthrough
CT: control target
= control target key end

     0   :  { %vm49_vm0 = vcmask 130048   ;;  %s230_s1 = inlined_call_operand.vmem [shape: bf16[16,128], index: 1, kind: input, shape index: {}]   ;;  %s231_s0 = inlined_call_operand.vmem [shape: bf16[32,16], index: 0, kind: input, shape index: {}]   ;;  %s232_s2 = inlined_call_operand.vmem [shape: f32[1,128], index: 2, kind: input, shape index: {}]   ;;  %s233_s3 = inlined_call_operand.vmem [shape: bf16[32,128], index: 3, kind: output, shape index: {}]  }
   0x1   :  { %v189_v0 = vld [vmem:[%s230_s1] sm:$0xff]   ;;  %v191_v2 = vld [vmem:[%s231_s0 + $0x8] sm:$0xff]  }
   0x2   :  { %v190_v1 = vld [vmem:[%s231_s0] sm:$0xff]   ;;  %183 = vmatprep.subr.bf16.mxu0 %v189_v0 }
   0x3   :  { %184 = vmatpush3.bf16.msra.mxu0 %v189_v0  ;;  %185 = vmatprep.mubr.msk.bf16.mxu0 %vm49_vm0, %v190_v1  ;;  %v160_v4 = vld [vmem:[%s232_s2] ss:$0 sm:$0xff] }
   0x6   :  { %186 = vmatmul.mubr.msk.bf16.vlgmr.msra.gmra.mrb[0].mxu0 %vm49_vm0, %v191_v2 }
  0xd9   :  { %v187_v3 = vpop.f32.mrb[0].mxu0 }
  0xda   :  { %v90_v5 = vpop.f32.mrb[1].mxu0  ;;  %v129_v7 = vadd.f32 %v187_v3, %v160_v4 }
  0xdb   :  { %v188_v6 = vpop.f32.mrb[2].mxu0  ;;  %v127_v10 = vadd.f32 %v160_v4, %v90_v5 }
  0xdc   :  { %v130_v8 = vadd.f32 %v188_v6, %v160_v4  ;;  %v93_v9 = vpop.f32.mrb[3].mxu0 }
  0xdd   :  { %v128_v11 = vadd.f32 %v160_v4, %v93_v9 }
  0xde   :  { %v177_v12 = vpack.c.bf16 %v130_v8, %v129_v7 }
  0xdf   :  { %v172_v13 = vpack.c.bf16 %v128_v11, %v127_v10 }
  0xe0   :  { %179 = vst [vmem:[%s233_s3 + $0x8] sm:$0xff] %v177_v12  }
  0xe1   :  { %173 = vst [vmem:[%s233_s3] sm:$0xff] %v172_v13  }

// kernel: bottleneck_forward.5
= control target key start
LH: loop header
LB: loop body
LE: loop exit
PB: predicated region body
PF: predicated region fallthrough
CT: control target
= control target key end

     0   :  { %s947_s12 = smov 0   ;;  %s949_s13 = smov 0   ;;  %s1113_s0 = inlined_call_operand.vmem [shape: bf16[2,10,2,8,128], index: 0, kind: input, shape index: {}]   ;;  %s1114_s1 = inlined_call_operand.vmem [shape: bf16[3,128,384], index: 1, kind: input, shape index: {}]   ;;  %s1115_s2 = inlined_call_operand.vmem [shape: f32[1,128], index: 2, kind: input, shape index: {}]   ;;  %s1116_s3 = inlined_call_operand.vmem [shape: bf16[2,4,4,128], index: 3, kind: output, shape index: {}]  }
   0x1   :  { %s951_s14 = smov 0   ;;  %s953_s15 = smov 0  }
   0x2   :  { %s955_s16 = smov 0   ;;  %s957_s17 = smov 0  }
   0x3   :  { %s959_s18 = smov 0   ;;  %s961_s19 = smov 0  }
   0x4   :  { %s963_s20 = smov 0  }
   0x5 LB: > { %s663_s21 = sadd.s32 4294967295, %s921_s20   ;;  %s22_s22 = sadd.s32 1, %s913_s18  ;;  %s921_s20 = sphi %s963_s20, %s13_s20   ;;  %s917_s19 = sphi %s961_s19, %s1125_s19   ;;  %s913_s18 = sphi %s959_s18, %s1124_s18   ;;  %s909_s17 = sphi %s957_s17, %s1123_s17   ;;  %s905_s16 = sphi %s955_s16, %s1122_s16   ;;  %s901_s15 = sphi %s953_s15, %s1121_s15   ;;  %s897_s14 = sphi %s951_s14, %s1120_s14   ;;  %s893_s13 = sphi %s949_s13, %s1119_s13   ;;  %s889_s12 = sphi %s947_s12, %s1118_s12  }
   0x6   : > { %p23_p0 = scmp.ge.s32.totalorder %s22_s22, 3  ;;  %s25_s23 = sadd.s32 1, %s917_s19 }
   0x7   : > { %s665_s24 = sshll.u32 %s917_s19, 1  ;;  %s36_s25 = sadd.s32 1, %s901_s15 }
   0x8   : > { %s1127_s22 = smov (%p23_p0, %s22_s22), 0  ;;  %s1129_s23 = smov (!%p23_p0, %s25_s23), %s917_s19 }
   0x9   : > { %s30_s26 = sadd.s32 %s913_s18, %s665_s24  ;;  %p43_p1 = scmp.ne.s32.totalorder %s901_s15, %s897_s14 }
   0xa   : > { %p27_p2 = scmp.ge.s32.totalorder %s1129_s23, 4  ;;  %p44_p3 = scmp.eq.s32.totalorder %s921_s20, 0 }
   0xb   : > { %s104_s27 = sadd.s32 1, %s893_s13  ;;  %p114_p4 = scmp.ne.s32.totalorder %s893_s13, %s889_s12 }
   0xc   : > { %s1131_s23 = smov (%p27_p2, %s1129_s23), 0  ;;  %p45_p5 = por %p44_p3, %p43_p1 }
   0xd   : > { %p115_p6 = scmp.eq.s32.totalorder %s663_s21, 11  ;;  %s666_s28 = sshll.u32 %s1131_s23, 1 }
   0xe   : > { %s101_s29 = ssub.s32 %s917_s19, %s1131_s23  ;;  %s32_s30 = sadd.s32 %s666_s28, %s1127_s22 }
   0xf   : > { %p102_p7 = scmp.eq.s32.totalorder %s101_s29, 0  ;;  %s33_s4 = ssub.s32 %s30_s26, %s32_s30 }
  0x10   : > { %p1013_p8 = por %p115_p6, %p114_p4  ;;  %p34_p9 = scmp.eq.s32.totalorder %s33_s4, 0 }
  0x11   : > { %s1018_s6 = scalar_select %p102_p7, %s893_s13, %s104_s27  }
  0x12   : > { %s1021_s7 = scalar_select %p34_p9, %s901_s15, %s36_s25  }
  0x13   : > { %p668_p10 = scmp.ge.s32.totalorder %s921_s20, 12 }
  0x15   : > { %143 = sbr.rel (%p668_p10) target bundleno = 35 (0x23), region = 24 }
  0x1c   : > { %146 = sbr.rel (!%p45_p5) target bundleno = 35 (0x23), region = 28  ;;  %s148_s8 = sand.u32 (%p45_p5), 1, %s901_s15  }
  0x1d   : > { %s710_s9 = sshll.u32 (%p45_p5), %s30_s26, 3  ;;  %s669_s10 = sshll.u32 (%p45_p5), %s148_s8, 4 }
  0x1e   : > { %s155_s24 = scalar_lea.vmem (%p45_p5), %s1113_s0, %s710_s9  ;;  %s150_s28 = scalar_lea.vmem (%p45_p5), [#allocation3], %s669_s10 }
  0x1f   : > { %v171_v0 = vld [vmem:[%s155_s24] sm:$0xff] (%p45_p5)   ;;  %v175_v1 = vld [vmem:[%s155_s24 + $0x50] sm:$0xff] (%p45_p5)  }
  0x20   : > { %172 = vst [vmem:[%s150_s28] sm:$0xff] (%p45_p5), %v171_v0   ;;  %176 = vst [vmem:[%s150_s28 + $0x8] sm:$0xff] (%p45_p5), %v175_v1  }
  0x23 PF: > { %p673_p11 = scmp.ge.s32.totalorder %s921_s20, 1  ;;  %p208_p12 = scmp.lt.s32.totalorder %s921_s20, 13 }
  0x25   : > { %p209_p13 = pnand %p673_p11, %p208_p12 }
  0x26   : > { %s215_s25 = sand.u32 (!%p209_p13), 1, %s897_s14   ;;  %s234_s26 = sand.u32 (!%p209_p13), 1, %s889_s12  }
  0x27   : > { %212 = sbr.rel (%p209_p13) target bundleno = 336 (0x150), region = 69  ;;  %s1032_s27 = sshll.u32 (!%p209_p13), %s215_s25, 4 }
  0x28   : > { %s675_s29 = sshll.u32 (!%p209_p13), %s234_s26, 2  ;;  %s217_s30 = scalar_lea.vmem (!%p209_p13), [#allocation3], %s1032_s27 }
  0x29   : > { %s1035_s4 = scalar_lea.vmem (!%p209_p13), [#allocation4], %s675_s29  ;;  %p676_p0 = scmp.ne.s32.totalorder (!%p209_p13), %s905_s16, 0 }
  0x2e   : > { %243 = sbr.rel (%p676_p0) target bundleno = 53 (0x35), region = 77  ;;  %v923_v2 = vmov (!%p676_p0), 0.0  }
  0x2f   : > { %244 = vst [vmem:[#allocation2] sm:$0xff] (!%p676_p0), %v923_v2  ;;  %245 = vst [vmem:[#allocation2 + $0x8] sm:$0xff] (!%p676_p0), %v923_v2 }
  0x35 PF: > { %s711_s8 = smul.u32 192, %s905_s16  ;;  %v924_v3 = vmov 0.0   ;;  %v925_v4 = vmov 0   ;;  %vm926_vm0 = vmmov 0   ;;  %v848_v29 = vld [vmem:[%s217_s30] ss:$8 sps:$4 sm:$0xff]   ;;  %v416_v31 = vlaneseq }
  0x36   : > { %721 = vmatprep.subr.bf16.mxu1 %v924_v3  ;;  %403 = vmatprep.mubr.bf16.mxu0 %v925_v4  ;;  %v850_v30 = vld [vmem:[%s217_s30 + $0x4] ss:$8 sps:$4 sm:$0xff]   ;;  %p704_p1 = scmp.ne.s32.totalorder %s905_s16, 2 }
  0x37   : > { %s1042_s9 = scalar_lea.vmem %s1114_s1, %s711_s8  ;;  %737 = vmatprep.mubr.msk.bf16.mxu1 %vm926_vm0, %v924_v3  ;;  %v417_v32 = vshrl.u32 %v416_v31, 7  ;;  %v520_v47 = vld [vmem:[#allocation2] sm:$0xff]  ;;  %v521_v48 = vld [vmem:[#allocation2 + $0x8] sm:$0xff] }
  0x38   : > { %v817_v5 = vld [vmem:[%s1042_s9 + $0x4] ss:$12 sps:$4 sm:$0xff]   ;;  %v819_v6 = vld [vmem:[%s1042_s9] ss:$12 sps:$4 sm:$0xff]   ;;  %v820_v7 = vld [vmem:[%s1042_s9 + $0x1c] ss:$12 sps:$4 sm:$0xff]  }
  0x39   : > { %371 = vmatprep.subr.bf16.mxu0 %v817_v5  ;;  %v822_v8 = vld [vmem:[%s1042_s9 + $0x8] ss:$12 sps:$4 sm:$0xff]   ;;  %v823_v9 = vld [vmem:[%s1042_s9 + $0x18] ss:$12 sps:$4 sm:$0xff]   ;;  %v826_v11 = vld [vmem:[%s1042_s9 + $0x20] ss:$12 sps:$4 sm:$0xff]  }
  0x3a   : > { %372 = vmatpush1.bf16.msra.mxu0 %v819_v6  ;;  %v824_v10 = vld [vmem:[%s1042_s9 + $0x34] ss:$12 sps:$4 sm:$0xff]   ;;  %722 = vmatpush3.bf16.msra.mxu1 %v822_v8  ;;  %v827_v12 = vld [vmem:[%s1042_s9 + $0x30] ss:$12 sps:$4 sm:$0xff]   ;;  %v828_v13 = vld [vmem:[%s1042_s9 + $0x4c] ss:$12 sps:$4 sm:$0xff]  }
  0x3b   : > { %373 = vmatprep.subr.bf16.mxu0 %v820_v7  ;;  %723 = vmatprep.subr.bf16.mxu1 %v924_v3  ;;  %v830_v14 = vld [vmem:[%s1042_s9 + $0x38] ss:$12 sps:$4 sm:$0xff]   ;;  %v831_v15 = vld [vmem:[%s1042_s9 + $0x48] ss:$12 sps:$4 sm:$0xff]   ;;  %v834_v17 = vld [vmem:[%s1042_s9 + $0x50] ss:$12 sps:$4 sm:$0xff]  }
  0x3c   : > { %v832_v16 = vld [vmem:[%s1042_s9 + $0x64] ss:$12 sps:$4 sm:$0xff]   ;;  %v835_v18 = vld [vmem:[%s1042_s9 + $0x60] ss:$12 sps:$4 sm:$0xff]   ;;  %v836_v19 = vld [vmem:[%s1042_s9 + $0x7c] ss:$12 sps:$4 sm:$0xff]  }
  0x3d   : > { %v838_v20 = vld [vmem:[%s1042_s9 + $0x68] ss:$12 sps:$4 sm:$0xff]   ;;  %v839_v21 = vld [vmem:[%s1042_s9 + $0x78] ss:$12 sps:$4 sm:$0xff]   ;;  %v842_v23 = vld [vmem:[%s1042_s9 + $0x80] ss:$12 sps:$4 sm:$0xff]  }
  0x3e   : > { %374 = vmatpush1.bf16.msra.mxu0 %v823_v9  ;;  %724 = vmatpush3.bf16.msra.mxu1 %v826_v11  ;;  %v840_v22 = vld [vmem:[%s1042_s9 + $0x94] ss:$12 sps:$4 sm:$0xff]   ;;  %v843_v24 = vld [vmem:[%s1042_s9 + $0x90] ss:$12 sps:$4 sm:$0xff]   ;;  %v844_v25 = vld [vmem:[%s1042_s9 + $0xac] ss:$12 sps:$4 sm:$0xff]  }
  0x3f   : > { %375 = vmatprep.subr.bf16.mxu0 %v824_v10  ;;  %725 = vmatprep.subr.bf16.mxu1 %v924_v3  ;;  %v846_v26 = vld [vmem:[%s1042_s9 + $0x98] ss:$12 sps:$4 sm:$0xff]   ;;  %v847_v27 = vld [vmem:[%s1042_s9 + $0xa8] ss:$12 sps:$4 sm:$0xff]   ;;  %v849_v28 = vld [vmem:[%s1042_s9 + $0xb0] ss:$12 sps:$4 sm:$0xff]  }
  0x40   : > { %vm418_vm1 = vcmp.lt.s32.totalorder %v417_v32, 7  ;;  %v705_v54 = vld [vmem:[%s1115_s2] ss:$0 sm:$0xff] (!%p704_p1) }
  0x42   : > { %376 = vmatpush1.bf16.msra.mxu0 %v827_v12  ;;  %726 = vmatpush3.bf16.msra.mxu1 %v830_v14 }
  0x43   : > { %377 = vmatprep.subr.bf16.mxu0 %v828_v13  ;;  %727 = vmatprep.subr.bf16.mxu1 %v924_v3 }
  0x46   : > { %378 = vmatpush1.bf16.msra.mxu0 %v831_v15  ;;  %728 = vmatpush3.bf16.msra.mxu1 %v834_v17 }
  0x47   : > { %379 = vmatprep.subr.bf16.mxu0 %v832_v16  ;;  %729 = vmatprep.subr.bf16.mxu1 %v924_v3 }
  0x4a   : > { %380 = vmatpush1.bf16.msra.mxu0 %v835_v18  ;;  %730 = vmatpush3.bf16.msra.mxu1 %v838_v20 }
  0x4b   : > { %381 = vmatprep.subr.bf16.mxu0 %v836_v19  ;;  %731 = vmatprep.subr.bf16.mxu1 %v924_v3 }
  0x4e   : > { %382 = vmatpush1.bf16.msra.mxu0 %v839_v21  ;;  %732 = vmatpush3.bf16.msra.mxu1 %v842_v23 }
  0x4f   : > { %383 = vmatprep.subr.bf16.mxu0 %v840_v22  ;;  %733 = vmatprep.subr.bf16.mxu1 %v924_v3 }
  0x52   : > { %384 = vmatpush1.bf16.msra.mxu0 %v843_v24  ;;  %734 = vmatpush3.bf16.msra.mxu1 %v846_v26 }
  0x53   : > { %385 = vmatprep.subr.bf16.mxu0 %v844_v25  ;;  %735 = vmatprep.subr.bf16.mxu1 %v924_v3 }
  0x56   : > { %386 = vmatpush1.bf16.msra.mxu0 %v847_v27  ;;  %736 = vmatpush3.bf16.msra.mxu1 %v849_v28 }
  0x59   : > { %404 = vmatmul.mubr.bf16.vlgmr.msra.gmra.mrb[0].mxu0 %v848_v29  ;;  %738 = vmatmul.mubr.bf16.vlgmr.msra.gmra.mrb[0].mxu1 %v850_v30 }
 0x12c   : > { %v405_v33 = vpop.f32.mrb[0].mxu0  ;;  %v511_v36 = vpop.f32.mrb[0].mxu1 }
 0x12d   : > { %v407_v34 = vpop.f32.mrb[1].mxu0  ;;  %v739_v38 = vpop.f32.mrb[1].mxu1 }
 0x12e   : > { %v409_v35 = vpop.f32.mrb[2].mxu0  ;;  %v414_v39 = vrot.slane %v407_v34, 1  ;;  %v514_v41 = vpop.f32.mrb[2].mxu1 }
 0x12f   : > { %v411_v37 = vpop.f32.mrb[3].mxu0  ;;  %v740_v42 = vpop.f32.mrb[3].mxu1 }
 0x130   : > { %v415_v40 = vrot.slane %v411_v37, 1 }
 0x132   : > { %v419_v43 = vsel %vm418_vm1, %v414_v39, %v415_v40  ;;  %v420_v44 = vsel %vm418_vm1, %v415_v40, %v414_v39 }
 0x133   : > { %v421_v45 = vadd.f32 %v419_v43, %v405_v33  ;;  %v422_v46 = vadd.f32 %v420_v44, %v409_v35  ;;  %529 = sbr.rel (%p704_p1) target bundleno = 328 (0x148), region = 81 }
 0x135   : > { %v518_v49 = vadd.f32 %v511_v36, %v421_v45  ;;  %v519_v50 = vadd.f32 %v514_v41, %v422_v46 }
 0x137   : > { %v522_v51 = vadd.f32 %v520_v47, %v518_v49  ;;  %v523_v52 = vadd.f32 %v521_v48, %v519_v50 }
 0x139   : > { %524 = vst [vmem:[#allocation2] sm:$0xff] %v522_v51  ;;  %525 = vst [vmem:[#allocation2 + $0x8] sm:$0xff] %v523_v52 }
 0x140   : > { %v530_v53 = vld [vmem:[#allocation2] sm:$0xff]  ;;  %v531_v55 = vld [vmem:[#allocation2 + $0x8] sm:$0xff] }
 0x141   : > { %v539_v56 = vadd.f32 %v705_v54, %v530_v53  ;;  %v540_v57 = vadd.f32 %v705_v54, %v531_v55 }
 0x143   : > { %v541_v58 = vmax.f32 %v539_v56, 0.0  ;;  %v542_v59 = vmax.f32 %v540_v57, 0.0 }
 0x145   : > { %v543_v60 = vpack.c.bf16 %v541_v58, %v541_v58  ;;  %v544_v61 = vpack.c.bf16 %v542_v59, %v542_v59 }
 0x147   : > { %545 = vst [vmem:[%s1035_s4] sm:$0x3] %v543_v60  ;;  %546 = vst [vmem:[%s1035_s4 + $0x2] sm:$0x3] %v544_v61 }
 0x148 PF: > { %553 = sbr.rel (!%p1013_p8) target bundleno = 336 (0x150), region = 85  ;;  %s707_s16 = sshll.u32 (%p1013_p8), %s909_s17, 1 }
 0x149   : > { %s555_s28 = scalar_lea.vmem (%p1013_p8), %s1116_s3, %s707_s16 }
 0x14e   : > { %v571_v62 = vld [vmem:[%s1035_s4] sm:$0x3] (%p1013_p8)  ;;  %v573_v63 = vld [vmem:[%s1035_s4 + $0x2] sm:$0x3] (%p1013_p8) }
 0x14f   : > { %572 = vst [vmem:[%s555_s28] sm:$0x3] %v571_v62  ;;  %574 = vst [vmem:[%s555_s28 + $0x8] sm:$0x3] %v573_v63 }
 0x150 PF: > { %s13_s20 = sadd.s32 1, %s921_s20   ;;  %s1118_s12 = smov %s893_s13 }
 0x151   : > { %p10_p2 = scmp.ge.s32.totalorder %s13_s20, 14   ;;  %s1119_s13 = smov %s1018_s6 }
 0x152   : > { %s1120_s14 = smov %s901_s15  ;;  %s1121_s15 = smov %s1021_s7 }
 0x153   : > { %s1122_s16 = smov %s913_s18  ;;  %s1123_s17 = smov %s917_s19 }
 0x154   : > { %s1124_s18 = smov %s1127_s22  ;;  %s1125_s19 = smov %s1131_s23 }
 0x155   :  { %12 = sbr.rel (!%p10_p2) target bundleno = 5 (0x5), region = 151 }

// kernel: bottleneck_forward.7
= control target key start
LH: loop header
LB: loop body
LE: loop exit
PB: predicated region body
PF: predicated region fallthrough
CT: control target
= control target key end

     0   :  { %s374_s1 = inlined_call_operand.vmem [shape: bf16[128,128], index: 1, kind: input, shape index: {}]   ;;  %s375_s0 = inlined_call_operand.vmem [shape: bf16[32,128], index: 0, kind: input, shape index: {}]   ;;  %s376_s3 = inlined_call_operand.vmem [shape: bf16[32,128], index: 3, kind: input, shape index: {}]   ;;  %s377_s2 = inlined_call_operand.vmem [shape: f32[1,128], index: 2, kind: input, shape index: {}]   ;;  %s378_s4 = inlined_call_operand.vmem [shape: bf16[32,128], index: 4, kind: output, shape index: {}]  }
   0x1   :  { %v294_v0 = vld [vmem:[%s374_s1] sm:$0xff]   ;;  %v295_v1 = vld [vmem:[%s374_s1 + $0x8] sm:$0xff]   ;;  %v296_v2 = vld [vmem:[%s374_s1 + $0x10] sm:$0xff]  }
   0x2   :  { %274 = vmatprep.subr.bf16.mxu0 %v294_v0  ;;  %v297_v3 = vld [vmem:[%s374_s1 + $0x18] sm:$0xff]   ;;  %v302_v4 = vld [vmem:[%s375_s0] sm:$0xff]   ;;  %v299_v6 = vld [vmem:[%s374_s1 + $0x28] sm:$0xff]  }
   0x3   :  { %275 = vmatpush3.bf16.msra.mxu0 %v294_v0  ;;  %290 = vmatprep.mubr.bf16.mxu0 %v302_v4  ;;  %v298_v5 = vld [vmem:[%s374_s1 + $0x20] sm:$0xff]   ;;  %v300_v7 = vld [vmem:[%s374_s1 + $0x30] sm:$0xff]   ;;  %v301_v8 = vld [vmem:[%s374_s1 + $0x38] sm:$0xff]  }
   0x4   :  { %276 = vmatprep.subr.bf16.mxu0 %v295_v1  ;;  %v303_v9 = vld [vmem:[%s375_s0 + $0x8] sm:$0xff]   ;;  %v245_v11 = vld [vmem:[%s376_s3] sm:$0xff]  }
   0x5   :  { %v262_v10 = vld [vmem:[%s376_s3 + $0x8] sm:$0xff]   ;;  %v235_v12 = vld [vmem:[%s377_s2] ss:$0 sm:$0xff]  ;;  %v246_v15 = vunpack.c.l.bf16 %v245_v11  ;;  %v247_v21 = vunpack.c.h.bf16 %v245_v11 }
   0x6   :  { %v250_v13 = vunpack.c.l.bf16 %v262_v10  ;;  %v251_v18 = vunpack.c.h.bf16 %v262_v10 }
   0x7   :  { %277 = vmatpush3.bf16.msra.mxu0 %v295_v1 }
   0x8   :  { %278 = vmatprep.subr.bf16.mxu0 %v296_v2 }
   0xb   :  { %279 = vmatpush3.bf16.msra.mxu0 %v296_v2 }
   0xc   :  { %280 = vmatprep.subr.bf16.mxu0 %v297_v3 }
   0xf   :  { %281 = vmatpush3.bf16.msra.mxu0 %v297_v3 }
  0x10   :  { %282 = vmatprep.subr.bf16.mxu0 %v298_v5 }
  0x13   :  { %283 = vmatpush3.bf16.msra.mxu0 %v298_v5 }
  0x14   :  { %284 = vmatprep.subr.bf16.mxu0 %v299_v6 }
  0x17   :  { %285 = vmatpush3.bf16.msra.mxu0 %v299_v6 }
  0x18   :  { %286 = vmatprep.subr.bf16.mxu0 %v300_v7 }
  0x1b   :  { %287 = vmatpush3.bf16.msra.mxu0 %v300_v7 }
  0x1c   :  { %288 = vmatprep.subr.bf16.mxu0 %v301_v8 }
  0x1f   :  { %289 = vmatpush3.bf16.msra.mxu0 %v301_v8 }
  0x22   :  { %291 = vmatmul.mubr.bf16.vlgmr.msra.gmra.mrb[0].mxu0 %v303_v9 }
  0xf5   :  { %v292_v14 = vpop.f32.mrb[0].mxu0 }
  0xf6   :  { %v183_v16 = vadd.f32 %v292_v14, %v235_v12  ;;  %v144_v17 = vpop.f32.mrb[1].mxu0 }
  0xf7   :  { %v181_v19 = vadd.f32 %v235_v12, %v144_v17  ;;  %v293_v20 = vpop.f32.mrb[2].mxu0 }
  0xf8   :  { %v195_v22 = vadd.f32 %v250_v13, %v183_v16  ;;  %v184_v23 = vadd.f32 %v293_v20, %v235_v12  ;;  %v147_v24 = vpop.f32.mrb[3].mxu0 }
  0xf9   :  { %v193_v25 = vadd.f32 %v246_v15, %v181_v19  ;;  %v182_v26 = vadd.f32 %v235_v12, %v147_v24 }
  0xfa   :  { %v196_v27 = vadd.f32 %v251_v18, %v184_v23  ;;  %v199_v29 = vmax.f32 %v195_v22, 0.0 }
  0xfb   :  { %v194_v28 = vadd.f32 %v247_v21, %v182_v26  ;;  %v197_v31 = vmax.f32 %v193_v25, 0.0 }
  0xfc   :  { %v200_v30 = vmax.f32 %v196_v27, 0.0 }
  0xfd   :  { %v198_v32 = vmax.f32 %v194_v28, 0.0 }
  0xfe   :  { %v260_v33 = vpack.c.bf16 %v200_v30, %v199_v29 }
  0xff   :  { %v255_v34 = vpack.c.bf16 %v198_v32, %v197_v31 }
 0x100   :  { %263 = vst [vmem:[%s378_s4 + $0x8] sm:$0xff] %v260_v33  }
 0x101   :  { %256 = vst [vmem:[%s378_s4] sm:$0xff] %v255_v34  }

</bundles_post_ra>
